<compile_context>
chip_gen: v5e
topology: v5e:2x2
jax: 0.10.0
libtpu: 0.0.40
codegen_flags: <defaults>
</compile_context>

<pallas_src>
import math

import jax
import jax.numpy as jnp
from jax.experimental import pallas as pl
from jax.experimental.pallas import tpu as pltpu


def get_same_padding(kernel_size):
    assert isinstance(kernel_size, int) and kernel_size % 2 == 1
    return kernel_size // 2


# --------------------------------------------------------------------------
# Pallas kernel: pointwise (1x1) convolution in NCHW layout.
# --------------------------------------------------------------------------
def _pointwise_conv_kernel(w_ref, x_ref, o_ref):
    # w_ref: (Cout, Cin) mixed filter (constant block index -> resident)
    # x_ref: (Cin, T)    lane-dense slab of flattened spatial positions
    # o_ref: (Cout, T)
    # DEFAULT precision: native single-pass MXU matmul in the input dtype,
    # f32 accumulation via preferred_element_type.
    o_ref[...] = jnp.dot(
        w_ref[...], x_ref[...], preferred_element_type=jnp.float32
    ).astype(o_ref.dtype)


_DEFAULT_VMEM_CAP = 64 * 1024 * 1024  # conservative fallback: v7x per-TC VMEM


def _vmem_capacity_bytes():
    """Per-generation VMEM capacity (v5e/v6e: 128 MiB, v7x: 64 MiB)."""
    try:
        cap = int(pltpu.get_tpu_info().vmem_capacity_bytes)
        if cap > 0:
            return cap
    except Exception:
        pass
    return _DEFAULT_VMEM_CAP


def _pick_tile(l, cin, cout, itemsize, vmem_cap):
    """Lane-dense spatial tile width, sized by bytes (multiple of 128)."""
    if l < 128:
        return int(l)  # block == full array dim is always legal
    # Working-set ceiling: 2 double-buffered input blocks + 2 output blocks
    # + the (default double-buffered) resident weight, kept well under this
    # generation's VMEM (~5/8 of capacity).
    budget = (vmem_cap * 5) // 8
    weight_bytes = 2 * cout * cin * itemsize
    avail = max(budget - weight_bytes, 2 << 20)
    per_col = 2 * (cin + cout) * itemsize  # double-buffered in + out column
    t_cap = avail // per_col
    # MiB-scale per-step traffic (~4 MiB of in+out per grid step) reaches
    # ~85% of the HBM roofline; no fixed column cap for small channel counts.
    t_target = (4 << 20) // max((cin + cout) * itemsize, 1)
    t = max(128, min(t_cap, max(t_target, 512)))
    t = (t // 128) * 128
    # Never tile wider than the 128-rounded-up spatial extent.
    l_up = ((l + 127) // 128) * 128
    return int(min(t, l_up))


def _conv1x1_pallas(x_nchw, w2d):
    """y[n, o, h, w] = sum_c w2d[o, c] * x[n, c, h, w] (1x1 conv, stride 1)."""
    n, cin, h, w_sp = x_nchw.shape
    cout = w2d.shape[0]
    hw = h * w_sp

    # Native-dtype MXU inputs (halves weight DMA for bf16 activations).
    w2d = w2d.astype(x_nchw.dtype)

    fold_batch = (hw < 128) and (n > 1)
    if fold_batch:
        # Small feature map: fold N onto the lane axis so output stores stay
        # lane-dense (avoids masked vst.msk partial stores for HW < 128).
        x3 = jnp.transpose(x_nchw, (1, 0, 2, 3)).reshape(1, cin, n * hw)
    else:
        x3 = x_nchw.reshape(n, cin, hw)  # contiguous reshape, no transpose

    nb, _, l = x3.shape
    itemsize = jnp.dtype(x3.dtype).itemsize
    vmem_cap = _vmem_capacity_bytes()
    t = _pick_tile(l, cin, cout, itemsize, vmem_cap)
    vmem_limit = int((vmem_cap * 3) // 4)

    # HW-tile axis first so megacore sharding (v7x, 2 TCs) still has work to
    # split for batch-1 inference; both axes are fully independent.
    grid = (pl.cdiv(l, t), nb)

    y3 = pl.pallas_call(
        _pointwise_conv_kernel,
        out_shape=jax.ShapeDtypeStruct((nb, cout, l), x3.dtype),
        grid=grid,
        in_specs=[
            # mixed filter: constant block index -> fetched once, resident
            # (its double-buffer is accounted for in the tile byte budget).
            pl.BlockSpec((cout, cin), lambda j, b: (0, 0)),
            # activation tile: batch squeezed, channels whole, spatial tiled
            pl.BlockSpec((None, cin, t), lambda j, b: (b, 0, j)),
        ],
        out_specs=pl.BlockSpec((None, cout, t), lambda j, b: (b, 0, j)),
        compiler_params=pltpu.CompilerParams(
            dimension_semantics=("parallel", "parallel"),
            vmem_limit_bytes=vmem_limit,
        ),
    )(w2d, x3)

    if fold_batch:
        return jnp.transpose(y3.reshape(cout, n, h, w_sp), (1, 0, 2, 3))
    return y3.reshape(n, cout, h, w_sp)


# --------------------------------------------------------------------------
# Module wrapper mirroring the PyTorch DynamicOutConv2dMixture.
# --------------------------------------------------------------------------
class DynamicOutConv2dMixturePallas:
    def __init__(self, in_channels, out_channels_list, kernel_size=1, stride=1,
                 dilation=1, *, key):
        self.in_channels = in_channels
        self.out_channel_list = list(out_channels_list)
        self.kernel_size = kernel_size
        self.stride = stride
        self.dilation = dilation
        max_out = max(self.out_channel_list)
        # nn.Conv2d default init: U(-1/sqrt(fan_in), 1/sqrt(fan_in)), bias=False
        fan_in = in_channels * kernel_size * kernel_size
        bound = 1.0 / math.sqrt(fan_in)
        self.weight = jax.random.uniform(
            key, (max_out, in_channels, kernel_size, kernel_size),
            dtype=jnp.float32, minval=-bound, maxval=bound)

    def get_active_filter(self, out_channel, in_channel):
        # Mask-based equivalent of slice[:out_channel, :in_channel] followed by
        # zero-padding the out-channel dim back to max(out_channel_list).
        # Works with both Python ints (mixture) and traced scalars (argmax),
        # so the whole forward stays on-device and jittable.
        max_out = max(self.out_channel_list)
        out_mask = (jnp.arange(max_out) < out_channel).astype(self.weight.dtype)
        in_mask = (jnp.arange(self.in_channels) < in_channel).astype(self.weight.dtype)
        return self.weight * out_mask[:, None, None, None] * in_mask[None, :, None, None]

    def get_filter_mixture(self, weights, use_argmax=False):
        weights = jnp.asarray(weights)
        channels = self.out_channel_list
        if use_argmax:
            # On-device argmax + channel mask: no host .item() sync, no jit break.
            idx = jnp.argmax(weights)
            out_channels = jnp.take(jnp.asarray(channels, dtype=jnp.int32), idx)
            return self.get_active_filter(out_channels, self.in_channels)
        conv_weight = 0
        for i, oc in enumerate(channels):
            conv_weight = conv_weight + weights[i] * self.get_active_filter(
                oc, self.in_channels)
        return conv_weight

    def __call__(self, x, weights, use_argmax=False):
        filters = self.get_filter_mixture(weights, use_argmax=use_argmax)
        padding = get_same_padding(self.kernel_size)
        if self.kernel_size == 1:
            # same-padding for k=1 is 0; dilation is a no-op; stride with a 1x1
            # kernel is exactly spatial subsampling.
            # TODO(synk): fuse the stride>1 subsampling into the kernel load
            # (strided pl.ds / unflattened H,W block) instead of this XLA slice.
            xs = x[:, :, ::self.stride, ::self.stride] if self.stride > 1 else x
            w2d = filters.reshape(filters.shape[0], filters.shape[1])
            return _conv1x1_pallas(xs, w2d)
        # TODO(synk): kernel_size > 1 ("same"-padded KxK conv with stride/dilation)
        # not lowered to Pallas; module default and NAS usage is kernel_size=1.
        raise NotImplementedError(
            "Pallas path implemented for kernel_size=1 (module default). "
            f"Got kernel_size={self.kernel_size} (padding would be {padding}).")


# --------------------------------------------------------------------------
# Demo / correctness check.
# --------------------------------------------------------------------------
def _conv_reference(x, filters, stride):
    # Exact f32 reference; the kernel runs DEFAULT (bf16-pass) MXU precision,
    # so comparisons below use a correspondingly loose tolerance.
    return jax.lax.conv_general_dilated(
        x, filters,
        window_strides=(stride, stride),
        padding=[(0, 0), (0, 0)],
        dimension_numbers=("NCHW", "OIHW", "NCHW"),
        precision=jax.lax.Precision.HIGHEST,
    )


if __name__ == "__main__":
    key = jax.random.PRNGKey(0)
    k_w, k_x, k_xs = jax.random.split(key, 3)

    in_channels = 4
    out_channels_list = [4, 8]
    module = DynamicOutConv2dMixturePallas(
        in_channels, out_channels_list, kernel_size=1, stride=1, dilation=1, key=k_w)

    mixture_weights = jnp.array([0.3, 0.7], dtype=jnp.float32)

    # Mixture branch, batched path (HW = 256 >= 128).
    x = jax.random.normal(k_x, (2, in_channels, 16, 16), dtype=jnp.float32)
    y = jax.block_until_ready(module(x, mixture_weights, use_argmax=False))
    filters_mix = module.get_filter_mixture(mixture_weights, use_argmax=False)
    y_ref = _conv_reference(x, filters_mix, module.stride)
    assert y.shape == (2, max(out_channels_list), 16, 16)
    assert y.dtype == x.dtype
    assert jnp.allclose(y, y_ref, atol=2e-2, rtol=2e-2)

    # Mixture branch, folded path (HW = 64 < 128: batch folded onto lanes).
    xs = jax.random.normal(k_xs, (2, in_channels, 8, 8), dtype=jnp.float32)
    ys = jax.block_until_ready(module(xs, mixture_weights, use_argmax=False))
    ys_ref = _conv_reference(xs, filters_mix, module.stride)
    assert ys.shape == (2, max(out_channels_list), 8, 8)
    assert jnp.allclose(ys, ys_ref, atol=2e-2, rtol=2e-2)

    # Argmax branch (single active filter, zero-padded out channels, on-device).
    y_am = jax.block_until_ready(module(x, mixture_weights, use_argmax=True))
    filters_am = module.get_filter_mixture(mixture_weights, use_argmax=True)
    y_am_ref = _conv_reference(x, filters_am, module.stride)
    assert jnp.allclose(y_am, y_am_ref, atol=2e-2, rtol=2e-2)

    print("KERNEL_OK")
</pallas_src>

<mosaic_0001>
module attributes {stable_mosaic.version = 11 : i64} {
  func.func @_pointwise_conv_kernel(%arg0: i32, %arg1: i32, %arg2: memref<8x4xf32, #tpu.memory_space<vmem>>, %arg3: memref<1x4x256xf32, #tpu.memory_space<vmem>>, %arg4: memref<1x8x256xf32, #tpu.memory_space<vmem>>) attributes {dimension_semantics = [#tpu.dimension_semantics<parallel>, #tpu.dimension_semantics<parallel>], iteration_bounds = array<i64: 1, 2>, scalar_prefetch = 0 : i64, scratch_operands = 0 : i64, tpu.core_type = #tpu.core_type<tc>, window_params = [{pipeline_mode = #tpu.pipeline_mode<synchronous>, transform_indices = @transform_0, window_bounds = array<i64: 8, 4>}, {transform_indices = @transform_1, window_bounds = array<i64: 1, 4, 256>}, {transform_indices = @transform_2, window_bounds = array<i64: 1, 8, 256>}]} {
    %c0 = arith.constant 0 : index
    %c0_0 = arith.constant 0 : index
    %0 = vector.load %arg2[%c0, %c0_0] : memref<8x4xf32, #tpu.memory_space<vmem>>, vector<8x4xf32>
    %c0_1 = arith.constant 0 : index
    %c0_2 = arith.constant 0 : index
    %c0_3 = arith.constant 0 : index
    %1 = vector.load %arg3[%c0_1, %c0_2, %c0_3] : memref<1x4x256xf32, #tpu.memory_space<vmem>>, vector<1x4x256xf32>
    %2 = vector.shape_cast %1 : vector<1x4x256xf32> to vector<4x256xf32>
    %cst = arith.constant dense<0.000000e+00> : vector<8x256xf32>
    %3 = tpu.matmul %0, %2, %cst {dimension_numbers = #tpu.dot_dimension_numbers<[1], [0], [0], [1], [0, 0, 1, 1], [], []>} : vector<8x4xf32>, vector<4x256xf32>, vector<8x256xf32> -> vector<8x256xf32>
    %c0_4 = arith.constant 0 : index
    %c0_5 = arith.constant 0 : index
    %c0_6 = arith.constant 0 : index
    %4 = vector.load %arg4[%c0_4, %c0_5, %c0_6] : memref<1x8x256xf32, #tpu.memory_space<vmem>>, vector<1x8x256xf32>
    %5 = vector.shape_cast %4 : vector<1x8x256xf32> to vector<8x256xf32>
    %6 = vector.shape_cast %3 : vector<8x256xf32> to vector<1x8x256xf32>
    tpu.vector_store %arg4[%c0_4, %c0_5, %c0_6], %6 {strides = array<i32>} : memref<1x8x256xf32, #tpu.memory_space<vmem>>, vector<1x8x256xf32>,
    return
  }
  func.func @transform_0(%arg0: i32, %arg1: i32) -> (i32, i32) {
    %c0_i32 = arith.constant 0 : i32
    %c0_i32_0 = arith.constant 0 : i32
    %c0_i32_1 = arith.constant 0 : i32
    return %c0_i32, %c0_i32_0 : i32, i32
  }
  func.func @transform_1(%arg0: i32, %arg1: i32) -> (i32, i32, i32) {
    %c0_i32 = arith.constant 0 : i32
    %c0_i32_0 = arith.constant 0 : i32
    return %arg1, %c0_i32, %arg0 : i32, i32, i32
  }
  func.func @transform_2(%arg0: i32, %arg1: i32) -> (i32, i32, i32) {
    %c0_i32 = arith.constant 0 : i32
    %c0_i32_0 = arith.constant 0 : i32
    return %arg1, %c0_i32, %arg0 : i32, i32, i32
  }
}

</mosaic_0001>

<bundles_post_ra>
// kernel: tpu_custom_call.1
= control target key start
LH: loop header
LB: loop body
LE: loop exit
PB: predicated region body
PF: predicated region fallthrough
CT: control target
= control target key end

     0   :  { %7 = vsyncpa [#allocation3], 0  ;;  %s678_s0 = inlined_call_operand.vmem [shape: f32[8,4], index: 0, kind: input, shape index: {}]   ;;  %s679_s1 = inlined_call_operand.hbm [shape: f32[2,4,256], index: 1, kind: input, shape index: {}]   ;;  %s680_s2 = inlined_call_operand.hbm [shape: f32[2,8,256], index: 2, kind: output, shape index: {}]  }
   0x1   :  { %9 = vsyncpa [#allocation3 + $0x1], 0 }
   0x2   :  { %10 = vsyncpa [#allocation4], 0 }
   0x3   :  { %12 = vsyncpa [#allocation4 + $0x1], 0  ;;  %s554_s9 = smov 0   ;;  %s556_s10 = smov 0  }
   0x4   :  { %s558_s11 = smov 0   ;;  %s560_s12 = smov 0  }
   0x5   :  { %s562_s13 = smov 0   ;;  %s564_s14 = smov 0  }
   0x6 LB: > { %s342_s15 = sadd.s32 4294967295, %s537_s14   ;;  %s343_s16 = sadd.s32 4294967294, %s537_s14   ;;  %s537_s14 = sphi %s564_s14, %s18_s14   ;;  %s533_s13 = sphi %s562_s13, %s689_s13   ;;  %s529_s12 = sphi %s560_s12, %s688_s12   ;;  %s525_s11 = sphi %s558_s11, %s687_s11   ;;  %s521_s10 = sphi %s556_s10, %s686_s10   ;;  %s517_s9 = sphi %s554_s9, %s685_s9  }
   0x7   : > { %s27_s17 = sadd.s32 1, %s533_s13  ;;  %s60_s18 = sadd.s32 1, %s525_s11 }
   0x8   : > { %p28_p0 = scmp.ge.s32.totalorder %s27_s17, 2  ;;  %p67_p1 = scmp.ne.s32.totalorder %s525_s11, %s521_s10 }
   0x9   : > { %p68_p2 = scmp.eq.s32.totalorder %s537_s14, 0  ;;  %p73_p3 = scmp.ne.s32.totalorder %s521_s10, %s517_s9 }
   0xa   : > { %s691_s17 = smov (%p28_p0, %s27_s17), 0  ;;  %p74_p5 = scmp.eq.s32.totalorder %s342_s15, 0 }
   0xb   : > { %p595_p4 = por %p68_p2, %p67_p1  ;;  %s55_s20 = ssub.s32 %s533_s13, %s691_s17 }
   0xc   : > { %p99_p6 = scmp.eq.s32.totalorder %s342_s15, 1  ;;  %p58_p7 = scmp.eq.s32.totalorder %s55_s20, 0 }
   0xd   : > { %p601_p8 = por %p74_p5, %p73_p3  ;;  %p105_p10 = scmp.eq.s32.totalorder %s343_s16, 1 }
   0xe   : > { %p605_p9 = por %p99_p6, %p67_p1  ;;  %p345_p12 = scmp.ge.s32.totalorder %s537_s14, 2 }
   0xf   : > { %s610_s23 = scalar_select %p58_p7, %s525_s11, %s60_s18  }
  0x10   : > { %p612_p11 = por %p105_p10, %p73_p3  ;;  %p375_p13 = scmp.lt.s32.totalorder %s537_s14, 2 }
  0x11   : > { %s128_s25 = sand.u32 1, %s525_s11   ;;  %s361_s27 = sshll.u32 %s533_s13, 3 }
  0x12   : > { %s346_s26 = sshll.u32 %s128_s25, 3  ;;  %s139_s30 = scalar_lea.hbm %s679_s1, %s361_s27 }
  0x13   : > { %s132_s3 = scalar_lea.vmem [#allocation2], %s346_s26  ;;  %s141_s5 = sshll.u32 %s139_s30, 4  ;;  %s142_s5 = int_to_ptr.hbm [resolvable:$true] %s141_s5 }
  0x14   : > { %s143_s4 = sshll.u32 %s132_s3, 4  ;;  %p368_p0 = pnand %p375_p13, %p595_p4  ;;  %s144_s4 = int_to_ptr.vmem [resolvable:$true] %s143_s4 }
  0x15   : > { %p349_p1 = scmp.ge.s32.totalorder %s537_s14, 1  ;;  %p148_p2 = scmp.lt.s32.totalorder %s537_s14, 3 }
  0x16   : > { %s129_s6 = scalar_lea.sflag [#allocation3], %s128_s25 }
  0x17   : > { %370 = dma.hbm_to_vmem [thread:$0]  (!%p368_p0), %s142_s5, 128, %s144_s4, %s129_s6  }
  0x18   : > { %p149_p3 = pnand %p349_p1, %p148_p2 }
  0x19   : > { %s628_s7 = sand.u32 (!%p149_p3), 1, %s521_s10  }
  0x1a   : > { %152 = sbr.rel (%p149_p3) target bundleno = 172 (0xac), region = 28  ;;  %s350_s8 = sshll.u32 (!%p149_p3), %s628_s7, 3 }
  0x1b   : > { %s155_s15 = scalar_lea.sflag (!%p149_p3), [#allocation3], %s628_s7  ;;  %s158_s16 = scalar_lea.vmem (!%p149_p3), [#allocation2], %s350_s8 }
  0x1f   : > { %508 = dma.done.wait (%p601_p8), %s155_s15, 128  }
  0x20   : > { %510 = vsyncadd (%p601_p8), %s155_s15, 4294967168  ;;  %v183_v0 = vld [vmem:[%s158_s16] sm:$0xff]  ;;  %vm192_vm0 = vcmask 1043456   ;;  %v182_v1 = vld [vmem:[%s678_s0] sm:$0xff]  ;;  %vm188_vm1 = vcmask 31744   ;;  %s351_s20 = sshll.u32 %s628_s7, 4 }
  0x21   : > { %185 = vst [vmem:[#allocation1] ss:$2 sm:$0xff] %v183_v0  ;;  %s362_s21 = sshll.u32 %s529_s12, 4  ;;  %s179_s28 = scalar_lea.vmem [#allocation5], %s351_s20 }
  0x22   : > { %s253_s27 = scalar_lea.hbm %s680_s2, %s362_s21  ;;  %s255_s29 = sshll.u32 %s179_s28, 4  ;;  %s256_s29 = int_to_ptr.vmem [resolvable:$true] %s255_s29 }
  0x23   : > { %s257_s30 = sshll.u32 %s253_s27, 4  ;;  %s240_s3 = scalar_lea.sflag [#allocation4], %s628_s7  ;;  %s258_s30 = int_to_ptr.hbm [resolvable:$true] %s257_s30 }
  0x24   : > { %s469_s4 = sshra.s32 %s258_s30, 4  ;;  %s475_s8 = scalar_lea.hbm %s680_s2, 32  ;;  %s470_s4 = int_to_ptr.hbm [resolvable:$true] %s469_s4 }
  0x25   : > { %s471_s5 = scalar_lea.hbm %s470_s4, 16  ;;  %p476_p7 = scmp.lt.s32.totalorder %s470_s4, %s680_s2 }
  0x26   : > { %p472_p4 = scmp.ne.s32.totalorder %s470_s4, %s471_s5  ;;  %p477_p8 = scmp.lt.s32.totalorder %s475_s8, %s471_s5 }
  0x28   : > { %v186_v2 = vld.sshfl [vmem:[#allocation1] sm:$0xff pattern:$0x75316420]  ;;  %v187_v3 = vld.sshfl [vmem:[#allocation1 + $0x8] sm:$0xff pattern:$0x75316420]  ;;  %p473_p5 = pnand %p472_p4, %p605_p9  ;;  %p478_p10 = por %p477_p8, %p476_p7 }
  0x29   : > { %352 = vmatpush.msk.msra.mxu0 %vm192_vm0, %v186_v2  ;;  %354 = vmatpush.msk.msra.mxu1 %vm192_vm0, %v187_v3 }
  0x2a   : > { %353 = vmatmul.msk.f32.vlgmr.msra.gmra.mxu0 %vm188_vm1, %v182_v1  ;;  %355 = vmatmul.msk.f32.vlgmr.msra.gmra.mxu1 %vm188_vm1, %v182_v1  ;;  %p474_p6 = pneg %p473_p5 }
  0x2c   : > { %p479_p13 = pnand %p478_p10, %p474_p6 }
  0xa7   : > { %v214_v4 = vpop.f32.mrf.mxu0  ;;  %v234_v5 = vpop.f32.mrf.mxu1 }
  0xa8   : > { %237 = vst [vmem:[%s179_s28] sm:$0xff] %v214_v4 }
  0xa9   : > { %238 = vst [vmem:[%s179_s28 + $0x8] sm:$0xff] %v234_v5 }
  0xaa   : > { %482 = shalt.err (!%p479_p13)
}
  0xab   : > { %365 = dma.vmem_to_hbm [thread:$0]  (%p605_p9), %s256_s29, 256, %s258_s30, %s240_s3  }
  0xac PF: > { %s269_s7 = sand.u32 1, %s517_s9   ;;  %p372_p0 = pnand %p345_p12, %p612_p11 }
  0xad   : > { %s270_s18 = scalar_lea.sflag [#allocation4], %s269_s7 }
  0xae   : > { %p373_p1 = pneg %p372_p0 }
  0xb0   : > { %512 = dma.done.wait (%p373_p1), %s270_s18, 256  }
  0xb1   : > { %514 = vsyncadd (%p373_p1), %s270_s18, 4294967040  ;;  %s18_s14 = sadd.s32 1, %s537_s14   ;;  %s685_s9 = smov %s521_s10 }
  0xb2   : > { %p15_p2 = scmp.ge.s32.totalorder %s18_s14, 4   ;;  %s686_s10 = smov %s525_s11 }
  0xb3   : > { %s687_s11 = smov %s610_s23  ;;  %s688_s12 = smov %s533_s13 }
  0xb4   : > { %s689_s13 = smov %s691_s17  ;;  %17 = sbr.rel (!%p15_p2) target bundleno = 6 (0x6), region = 73 }
  0xb9   :  { %276 = vsyncpa [#allocation3], 1 }
  0xba   :  { %278 = vsyncpa [#allocation3 + $0x1], 1 }
  0xbb   :  { %279 = vsyncpa [#allocation4], 1 }
  0xbc   :  { %281 = vsyncpa [#allocation4 + $0x1], 1 }

</bundles_post_ra>
